<compile_context>
chip_gen: v5e
topology: v5e:2x2
jax: 0.10.0
libtpu: 0.0.40
codegen_flags: <defaults>
</compile_context>

<pallas_src>
import functools

import jax
import jax.numpy as jnp
from jax.experimental import pallas as pl
from jax.experimental.pallas import tpu as pltpu


_VMEM_LIMIT_BYTES = 32 * 1024 * 1024      # safe on v5e (<=128 MiB), v6e, v7x (64 MiB phys)
_DEFAULT_BLOCK_BUDGET = 2 * 1024 * 1024   # per x/y block; ~4x with in/out double-buffering


def _se_fused_kernel(x_ref, w1t_ref, b1_ref, w2t_ref, b2_ref, y_ref):
    """One-pass SE on a (Bt, HW, C) block: pool + 2-layer MLP + gate * x."""
    x = x_ref[...]                                              # (Bt, HW, C) native dtype
    hw = x_ref.shape[1]
    # Global average pool over the spatial (sublane) axis; accumulate in f32
    # without materializing a full-tile f32 copy of x.
    pooled = jnp.sum(x, axis=1, dtype=jnp.float32) * (1.0 / hw)  # (Bt, C)
    # Squeeze / excite MLP, batched over the Bt rows of this block (MXU).
    h1 = jnp.dot(pooled, w1t_ref[...], preferred_element_type=jnp.float32)
    h1 = jnp.maximum(h1 + b1_ref[...], 0.0)                      # (Bt, hidden)
    h2 = jnp.dot(h1, w2t_ref[...], preferred_element_type=jnp.float32)
    gate = jax.nn.sigmoid(h2 + b2_ref[...])                      # (Bt, C) f32
    # Cast only the tiny gate, broadcast over sublanes (HW), lane-dense store.
    y_ref[...] = gate.astype(y_ref.dtype)[:, None, :] * x


def _se_scale_kernel(gate_ref, x_ref, y_ref):
    """Pure streaming scale: y = per-channel gate * x (lane-dense on C)."""
    y_ref[...] = gate_ref[...] * x_ref[...]


def prepare_se_params(w1, b1, w2, b2):
    """Pre-transpose the nn.Linear weights once, outside the hot path."""
    w1 = jnp.asarray(w1)
    b1 = jnp.asarray(b1)
    w2 = jnp.asarray(w2)
    b2 = jnp.asarray(b2)
    return w1.T, b1.reshape(1, -1), w2.T, b2.reshape(1, -1)


@functools.partial(jax.jit, static_argnames=("block_budget_bytes",))
def spatial_se(x, w1t, b1, w2t, b2, *, block_budget_bytes=_DEFAULT_BLOCK_BUDGET):
    """SpatialSE forward.

    x: (B, C, H, W); w1t: (C, hidden); b1: (1, hidden); w2t: (hidden, C); b2: (1, C).
    """
    B, C, H, W = x.shape
    hidden = w1t.shape[1]
    HW = H * W
    itemsize = jnp.dtype(x.dtype).itemsize

    # Channels-last working layout: (B, HW, C) -> C on the 128-lane axis.
    x_t = jnp.transpose(x, (0, 2, 3, 1)).reshape(B, HW, C)

    slab_bytes = HW * C * itemsize  # one batch element resident in VMEM

    if slab_bytes <= block_budget_bytes:
        # ---- one-pass fused kernel: pack Bt batch elements per grid step ----
        bt = max(1, min(block_budget_bytes // slab_bytes, B))
        if B >= 2:
            # Keep >= 2 grid steps so both v7x TensorCores get work.
            bt = min(bt, pl.cdiv(B, 2))
        nb = pl.cdiv(B, bt)

        y_t = pl.pallas_call(
            _se_fused_kernel,
            out_shape=jax.ShapeDtypeStruct((B, HW, C), x.dtype),
            grid=(nb,),
            in_specs=[
                pl.BlockSpec((bt, HW, C), lambda b: (b, 0, 0)),
                pl.BlockSpec((C, hidden), lambda b: (0, 0)),   # resident weights
                pl.BlockSpec((1, hidden), lambda b: (0, 0)),
                pl.BlockSpec((hidden, C), lambda b: (0, 0)),
                pl.BlockSpec((1, C), lambda b: (0, 0)),
            ],
            out_specs=pl.BlockSpec((bt, HW, C), lambda b: (b, 0, 0)),
            compiler_params=pltpu.CompilerParams(
                dimension_semantics=("parallel",),
                vmem_limit_bytes=_VMEM_LIMIT_BYTES),
        )(x_t, w1t, b1, w2t, b2)
    else:
        # ---- two-pass fallback when a per-batch slab exceeds the VMEM budget ----
        # Pool + squeeze/excite MLP batched over B (negligible FLOPs, plain JAX),
        # then a pure streaming scale kernel tiled over (B, HW) at HBM roofline.
        pooled = jnp.mean(x_t, axis=1, dtype=jnp.float32)              # (B, C)
        h1 = jnp.maximum(pooled @ w1t.astype(jnp.float32) + b1, 0.0)   # (B, hidden)
        gate = jax.nn.sigmoid(h1 @ w2t.astype(jnp.float32) + b2)       # (B, C)
        gate = gate.astype(x.dtype).reshape(B, 1, C)

        thw = max(8, (block_budget_bytes // (C * itemsize)) // 8 * 8)  # mult of 8
        thw = min(thw, HW)
        n_hw = pl.cdiv(HW, thw)

        y_t = pl.pallas_call(
            _se_scale_kernel,
            out_shape=jax.ShapeDtypeStruct((B, HW, C), x.dtype),
            grid=(B, n_hw),
            in_specs=[
                pl.BlockSpec((1, 1, C), lambda b, s: (b, 0, 0)),
                pl.BlockSpec((1, thw, C), lambda b, s: (b, s, 0)),
            ],
            out_specs=pl.BlockSpec((1, thw, C), lambda b, s: (b, s, 0)),
            compiler_params=pltpu.CompilerParams(
                dimension_semantics=("parallel", "parallel"),
                vmem_limit_bytes=_VMEM_LIMIT_BYTES),
        )(gate, x_t)

    # Back to NCHW to match the PyTorch module.
    return y_t.reshape(B, H, W, C).transpose(0, 3, 1, 2)


def spatial_se_ref(x, w1, b1, w2, b2):
    """Pure-JAX reference matching the PyTorch module."""
    pooled = jnp.mean(x, axis=(2, 3))                        # (B, C)
    h = jnp.maximum(pooled @ w1.T + b1, 0.0)                 # (B, hidden)
    h = jax.nn.sigmoid(h @ w2.T + b2)                        # (B, C)
    return h[:, :, None, None] * x


if __name__ == "__main__":
    # Small shapes consistent with the module: channels divisible by ratio=8.
    B, C, H, W = 2, 32, 8, 8
    ratio = 8
    hidden = C // ratio

    key = jax.random.PRNGKey(0)
    kx, k1, k2, k3, k4 = jax.random.split(key, 5)

    x = jax.random.normal(kx, (B, C, H, W), dtype=jnp.float32)
    # Deterministic synthetic parameters (shapes from nn.Linear in __init__).
    w1 = jax.random.normal(k1, (hidden, C), dtype=jnp.float32) * 0.1
    b1 = jax.random.normal(k2, (hidden,), dtype=jnp.float32) * 0.1
    w2 = jax.random.normal(k3, (C, hidden), dtype=jnp.float32) * 0.1
    b2 = jax.random.normal(k4, (C,), dtype=jnp.float32) * 0.1

    w1t, b1r, w2t, b2r = prepare_se_params(w1, b1, w2, b2)
    y_ref = spatial_se_ref(x, w1, b1, w2, b2)

    # Fused one-pass path (default VMEM budget).
    y = jax.block_until_ready(spatial_se(x, w1t, b1r, w2t, b2r))
    assert y.shape == (B, C, H, W)
    assert jnp.allclose(y, y_ref, atol=1e-5, rtol=1e-5), "fused path mismatch"

    # Two-pass (batched pool/MLP + streaming scale) path, forced via tiny budget.
    y2 = jax.block_until_ready(
        spatial_se(x, w1t, b1r, w2t, b2r, block_budget_bytes=1024))
    assert jnp.allclose(y2, y_ref, atol=1e-5, rtol=1e-5), "scale path mismatch"

    print("KERNEL_OK")
</pallas_src>

<mosaic_0001>
module attributes {stable_mosaic.version = 11 : i64} {
  func.func @_se_fused_kernel(%arg0: i32, %arg1: memref<1x64x32xf32, #tpu.memory_space<vmem>>, %arg2: memref<32x4xf32, #tpu.memory_space<vmem>>, %arg3: memref<1x4xf32, #tpu.memory_space<vmem>>, %arg4: memref<4x32xf32, #tpu.memory_space<vmem>>, %arg5: memref<1x32xf32, #tpu.memory_space<vmem>>, %arg6: memref<1x64x32xf32, #tpu.memory_space<vmem>>) attributes {dimension_semantics = [#tpu.dimension_semantics<parallel>], iteration_bounds = array<i64: 2>, scalar_prefetch = 0 : i64, scratch_operands = 0 : i64, tpu.core_type = #tpu.core_type<tc>, window_params = [{transform_indices = @transform_0, window_bounds = array<i64: 1, 64, 32>}, {pipeline_mode = #tpu.pipeline_mode<synchronous>, transform_indices = @transform_1, window_bounds = array<i64: 32, 4>}, {pipeline_mode = #tpu.pipeline_mode<synchronous>, transform_indices = @transform_2, window_bounds = array<i64: 1, 4>}, {pipeline_mode = #tpu.pipeline_mode<synchronous>, transform_indices = @transform_3, window_bounds = array<i64: 4, 32>}, {pipeline_mode = #tpu.pipeline_mode<synchronous>, transform_indices = @transform_4, window_bounds = array<i64: 1, 32>}, {transform_indices = @transform_5, window_bounds = array<i64: 1, 64, 32>}]} {
    %c0 = arith.constant 0 : index
    %c0_0 = arith.constant 0 : index
    %c0_1 = arith.constant 0 : index
    %0 = vector.load %arg1[%c0, %c0_0, %c0_1] : memref<1x64x32xf32, #tpu.memory_space<vmem>>, vector<1x64x32xf32>
    %cst = arith.constant dense<0.000000e+00> : vector<1x32xf32>
    %1 = vector.multi_reduction <add>, %0, %cst [1] : vector<1x64x32xf32> to vector<1x32xf32>
    %cst_2 = arith.constant 1.562500e-02 : f32
    %2 = vector.broadcast %cst_2 : f32 to vector<1x32xf32>
    %3 = arith.mulf %1, %2 : vector<1x32xf32>
    %c0_3 = arith.constant 0 : index
    %c0_4 = arith.constant 0 : index
    %4 = vector.load %arg2[%c0_3, %c0_4] : memref<32x4xf32, #tpu.memory_space<vmem>>, vector<32x4xf32>
    %cst_5 = arith.constant dense<0.000000e+00> : vector<1x4xf32>
    %5 = tpu.matmul %3, %4, %cst_5 {dimension_numbers = #tpu.dot_dimension_numbers<[1], [0], [0], [1], [0, 0, 1, 1], [], []>} : vector<1x32xf32>, vector<32x4xf32>, vector<1x4xf32> -> vector<1x4xf32>
    %c0_6 = arith.constant 0 : index
    %c0_7 = arith.constant 0 : index
    %6 = vector.load %arg3[%c0_6, %c0_7] : memref<1x4xf32, #tpu.memory_space<vmem>>, vector<1x4xf32>
    %7 = arith.addf %5, %6 : vector<1x4xf32>
    %cst_8 = arith.constant 0.000000e+00 : f32
    %8 = vector.broadcast %cst_8 : f32 to vector<1x4xf32>
    %9 = arith.maximumf %7, %8 : vector<1x4xf32>
    %c0_9 = arith.constant 0 : index
    %c0_10 = arith.constant 0 : index
    %10 = vector.load %arg4[%c0_9, %c0_10] : memref<4x32xf32, #tpu.memory_space<vmem>>, vector<4x32xf32>
    %cst_11 = arith.constant dense<0.000000e+00> : vector<1x32xf32>
    %11 = tpu.matmul %9, %10, %cst_11 {dimension_numbers = #tpu.dot_dimension_numbers<[1], [0], [0], [1], [0, 0, 1, 1], [], []>} : vector<1x4xf32>, vector<4x32xf32>, vector<1x32xf32> -> vector<1x32xf32>
    %c0_12 = arith.constant 0 : index
    %c0_13 = arith.constant 0 : index
    %12 = vector.load %arg5[%c0_12, %c0_13] : memref<1x32xf32, #tpu.memory_space<vmem>>, vector<1x32xf32>
    %13 = arith.addf %11, %12 : vector<1x32xf32>
    %14 = arith.negf %13 : vector<1x32xf32>
    %15 = math.exp %14 : vector<1x32xf32>
    %cst_14 = arith.constant 1.000000e+00 : f32
    %16 = vector.broadcast %cst_14 : f32 to vector<1x32xf32>
    %17 = arith.addf %16, %15 : vector<1x32xf32>
    %18 = arith.divf %16, %17 : vector<1x32xf32>
    %19 = vector.shape_cast %18 : vector<1x32xf32> to vector<1x1x32xf32>
    %20 = vector.broadcast %19 : vector<1x1x32xf32> to vector<1x64x32xf32>
    %21 = arith.mulf %20, %0 : vector<1x64x32xf32>
    %c0_15 = arith.constant 0 : index
    %c0_16 = arith.constant 0 : index
    %c0_17 = arith.constant 0 : index
    %22 = vector.load %arg6[%c0_15, %c0_16, %c0_17] : memref<1x64x32xf32, #tpu.memory_space<vmem>>, vector<1x64x32xf32>
    tpu.vector_store %arg6[%c0_15, %c0_16, %c0_17], %21 {strides = array<i32>} : memref<1x64x32xf32, #tpu.memory_space<vmem>>, vector<1x64x32xf32>,
    return
  }
  func.func @transform_0(%arg0: i32) -> (i32, i32, i32) {
    %c0_i32 = arith.constant 0 : i32
    %c0_i32_0 = arith.constant 0 : i32
    %c0_i32_1 = arith.constant 0 : i32
    return %arg0, %c0_i32, %c0_i32_0 : i32, i32, i32
  }
  func.func @transform_1(%arg0: i32) -> (i32, i32) {
    %c0_i32 = arith.constant 0 : i32
    %c0_i32_0 = arith.constant 0 : i32
    %c0_i32_1 = arith.constant 0 : i32
    return %c0_i32, %c0_i32_0 : i32, i32
  }
  func.func @transform_2(%arg0: i32) -> (i32, i32) {
    %c0_i32 = arith.constant 0 : i32
    %c0_i32_0 = arith.constant 0 : i32
    %c0_i32_1 = arith.constant 0 : i32
    return %c0_i32, %c0_i32_0 : i32, i32
  }
  func.func @transform_3(%arg0: i32) -> (i32, i32) {
    %c0_i32 = arith.constant 0 : i32
    %c0_i32_0 = arith.constant 0 : i32
    %c0_i32_1 = arith.constant 0 : i32
    return %c0_i32, %c0_i32_0 : i32, i32
  }
  func.func @transform_4(%arg0: i32) -> (i32, i32) {
    %c0_i32 = arith.constant 0 : i32
    %c0_i32_0 = arith.constant 0 : i32
    %c0_i32_1 = arith.constant 0 : i32
    return %c0_i32, %c0_i32_0 : i32, i32
  }
  func.func @transform_5(%arg0: i32) -> (i32, i32, i32) {
    %c0_i32 = arith.constant 0 : i32
    %c0_i32_0 = arith.constant 0 : i32
    %c0_i32_1 = arith.constant 0 : i32
    return %arg0, %c0_i32, %c0_i32_0 : i32, i32, i32
  }
}

</mosaic_0001>

<bundles_post_ra>
// kernel: spatial_se.1
= control target key start
LH: loop header
LB: loop body
LE: loop exit
PB: predicated region body
PF: predicated region fallthrough
CT: control target
= control target key end

     0   :  { %10 = vsyncpa [#allocation3], 0  ;;  %s863_s0 = inlined_call_operand.hbm [shape: f32[2,64,32], index: 0, kind: input, shape index: {}]   ;;  %s864_s1 = inlined_call_operand.vmem [shape: f32[32,4], index: 1, kind: input, shape index: {}]   ;;  %s865_s2 = inlined_call_operand.vmem [shape: f32[1,4], index: 2, kind: input, shape index: {}]   ;;  %s866_s3 = inlined_call_operand.vmem [shape: f32[4,32], index: 3, kind: input, shape index: {}]   ;;  %s867_s4 = inlined_call_operand.vmem [shape: f32[1,32], index: 4, kind: input, shape index: {}]   ;;  %s868_s5 = inlined_call_operand.hbm [shape: f32[2,64,32], index: 5, kind: output, shape index: {}]  }
   0x1   :  { %12 = vsyncpa [#allocation3 + $0x1], 0 }
   0x2   :  { %13 = vsyncpa [#allocation4], 0 }
   0x3   :  { %15 = vsyncpa [#allocation4 + $0x1], 0  ;;  %s666_s18 = smov 0   ;;  %s668_s19 = smov 0  }
   0x4   :  { %s670_s20 = smov 0   ;;  %s672_s21 = smov 0  }
   0x5 LB: > { %s687_s22 = sadd.s32 4294967295, %s630_s21   ;;  %s460_s23 = sadd.s32 4294967294, %s630_s21   ;;  %s630_s21 = sphi %s672_s21, %s878_s21   ;;  %s626_s20 = sphi %s670_s20, %s877_s20   ;;  %s622_s19 = sphi %s668_s19, %s876_s19   ;;  %s618_s18 = sphi %s666_s18, %s875_s18  }
   0x6   : > { %s691_s24 = sadd.s32 1, %s630_s21   ;;  %s28_s25 = sadd.s32 1, %s626_s20 }
   0x7   : > { %s25_s26 = ssub.s32 %s630_s21, %s691_s24  ;;  %p35_p0 = scmp.ne.s32.totalorder %s626_s20, %s622_s19 }
   0x8   : > { %p26_p1 = scmp.eq.s32.totalorder %s25_s26, 0  ;;  %p36_p2 = scmp.eq.s32.totalorder %s630_s21, 0 }
   0x9   : > { %p41_p3 = scmp.ne.s32.totalorder %s622_s19, %s618_s18  ;;  %p42_p4 = scmp.eq.s32.totalorder %s687_s22, 0 }
   0xa   : > { %s703_s27 = scalar_select %p26_p1, %s626_s20, %s28_s25  }
   0xb   : > { %p705_p5 = por %p36_p2, %p35_p0  ;;  %p709_p6 = por %p42_p4, %p41_p3 }
   0xc   : > { %p149_p7 = scmp.eq.s32.totalorder %s687_s22, 1  ;;  %p155_p8 = scmp.eq.s32.totalorder %s460_s23, 1 }
   0xd   : > { %p492_p10 = scmp.lt.s32.totalorder %s630_s21, 2  ;;  %s187_s7 = sand.u32 1, %s626_s20  }
   0xe   : > { %p716_p11 = por %p149_p7, %p35_p0  ;;  %p720_p12 = por %p155_p8, %p41_p3 }
   0xf   : > { %s478_s8 = sshll.u32 %s630_s21, 6  ;;  %s463_s9 = sshll.u32 %s187_s7, 6 }
  0x10   : > { %s196_s12 = scalar_lea.hbm %s863_s0, %s478_s8  ;;  %s191_s14 = scalar_lea.vmem [#allocation2], %s463_s9 }
  0x11   : > { %s197_s13 = sshll.u32 %s196_s12, 4  ;;  %s199_s15 = sshll.u32 %s191_s14, 4  ;;  %s198_s13 = int_to_ptr.hbm [resolvable:$true] %s197_s13  ;;  %s200_s15 = int_to_ptr.vmem [resolvable:$true] %s199_s15 }
  0x12   : > { %p731_p13 = pnand %p492_p10, %p705_p5  ;;  %p466_p0 = scmp.ge.s32.totalorder %s630_s21, 1 }
  0x13   : > { %p207_p1 = scmp.lt.s32.totalorder %s630_s21, 3  ;;  %s188_s17 = scalar_lea.sflag [#allocation3], %s187_s7 }
  0x14   : > { %s534_s23 = sshra.s32 %s198_s13, 4  ;;  %p538_p3 = pneg %p731_p13  ;;  %s535_s23 = int_to_ptr.hbm [resolvable:$true] %s534_s23 }
  0x15   : > { %s536_s25 = scalar_lea.hbm %s535_s23, 64  ;;  %s541_s28 = scalar_lea.hbm %s863_s0, 128 }
  0x16   : > { %p537_p2 = scmp.ne.s32.totalorder %s535_s23, %s536_s25  ;;  %p542_p5 = scmp.lt.s32.totalorder %s535_s23, %s863_s0 }
  0x17   : > { %p543_p8 = scmp.lt.s32.totalorder %s541_s28, %s536_s25 }
  0x18   : > { %p539_p4 = pnand %p538_p3, %p537_p2 }
  0x19   : > { %p544_p10 = por %p543_p8, %p542_p5 }
  0x1a   : > { %p540_p7 = pneg %p539_p4 }
  0x1c   : > { %p545_p9 = pnand %p544_p10, %p540_p7 }
  0x1e   : > { %548 = shalt.err (!%p545_p9)
}
  0x1f   : > { %s632_s7 = smov 128   ;;  %s633_s11 = smov 8  }
  0x20   : > { %487 = dma.hbm_to_vmem [thread:$0]  (!%p731_p13), %s198_s13, 1024, %s200_s15, %s188_s17, %s632_s7, %s632_s7, %s633_s11  }
  0x21   : > { %p208_p2 = pnand %p466_p0, %p207_p1 }
  0x22   : > { %s752_s12 = sand.u32 (!%p208_p2), 1, %s622_s19  }
  0x23   : > { %211 = sbr.rel (%p208_p2) target bundleno = 373 (0x175), region = 40  ;;  %s467_s14 = sshll.u32 (!%p208_p2), %s752_s12, 6 }
  0x24   : > { %s214_s23 = scalar_lea.sflag (!%p208_p2), [#allocation3], %s752_s12  ;;  %s217_s25 = scalar_lea.vmem (!%p208_p2), [#allocation2], %s467_s14 }
  0x28   : > { %609 = dma.done.wait (%p709_p6), %s214_s23, 1024  }
  0x29   : > { %611 = vsyncadd (%p709_p6), %s214_s23, 4294966272  ;;  %vm253_vm0 = vcmask 261120   ;;  %v279_v0 = vld [vmem:[%s864_s1 + $0x18] sm:$0xff]  ;;  %v278_v1 = vld [vmem:[%s864_s1 + $0x10] sm:$0xff]  ;;  %vm311_vm1 = vcmask 1043456   ;;  %vm307_vm2 = vcmask 31744  }
  0x2a   : > { %296 = vmatpush.msra.mxu0 %v279_v0  ;;  %v768_v2 = vld [vmem:[%s217_s25] sm:$0xff]  ;;  %v770_v3 = vld [vmem:[%s217_s25 + $0x8] sm:$0xff]  ;;  %v775_v5 = vld [vmem:[%s217_s25 + $0x10] sm:$0xff]  ;;  %s479_s13 = sshll.u32 %s687_s22, 6  ;;  %s244_s26 = scalar_lea.vmem [#allocation5], %s467_s14 }
  0x2b   : > { %v277_v4 = vld [vmem:[%s864_s1 + $0x8] sm:$0xff]  ;;  %v777_v6 = vld [vmem:[%s217_s25 + $0x18] sm:$0xff]  ;;  %v254_v7 = vsel %vm253_vm0, %v768_v2, 0.0  ;;  %v255_v8 = vsel %vm253_vm0, %v770_v3, 0.0  ;;  %v783_v9 = vld [vmem:[%s217_s25 + $0x20] sm:$0xff]  ;;  %v257_v11 = vsel %vm253_vm0, %v775_v5, 0.0  ;;  %s383_s17 = scalar_lea.hbm %s868_s5, %s479_s13 }
  0x2c   : > { %297 = vmatpush.msra.mxu0 %v278_v1  ;;  %v256_v10 = vadd.f32 %v255_v8, %v254_v7  ;;  %v276_v12 = vld [vmem:[%s864_s1] sm:$0xff]  ;;  %v259_v13 = vsel %vm253_vm0, %v777_v6, 0.0  ;;  %v792_v14 = vld [vmem:[%s217_s25 + $0x28] sm:$0xff]  ;;  %v261_v16 = vsel %vm253_vm0, %v783_v9, 0.0  ;;  %v796_v17 = vld [vmem:[%s217_s25 + $0x30] sm:$0xff]  ;;  %s384_s22 = sshll.u32 %s244_s26, 4  ;;  %s385_s22 = int_to_ptr.vmem [resolvable:$true] %s384_s22 }
  0x2d   : > { %v263_v19 = vsel %vm253_vm0, %v792_v14, 0.0  ;;  %v252_v20 = vld [vmem:[%s217_s25 + $0x38] sm:$0xff]  ;;  %v265_v22 = vsel %vm253_vm0, %v796_v17, 0.0  ;;  %v305_v34 = vld [vmem:[%s866_s3] sm:$0xf]  ;;  %s386_s8 = sshll.u32 %s383_s17, 4  ;;  %s387_s8 = int_to_ptr.hbm [resolvable:$true] %s386_s8 }
  0x2e   : > { %298 = vmatpush.msra.mxu0 %v277_v4  ;;  %v258_v15 = vadd.f32 %v257_v11, %v256_v10  ;;  %v267_v24 = vsel %vm253_vm0, %v252_v20, 0.0  ;;  %470 = vmatpush.msk.msra.mxu1 %vm311_vm1, %v305_v34  ;;  %v280_v35 = vld [vmem:[%s865_s2] sm:$0x1]  ;;  %s372_s14 = scalar_lea.sflag [#allocation4], %s752_s12  ;;  %s578_s29 = sshra.s32 %s387_s8, 4  ;;  %s579_s29 = int_to_ptr.hbm [resolvable:$true] %s578_s29 }
  0x2f   : > { %v306_v39 = vld [vmem:[%s867_s4] sm:$0x1]  ;;  %s580_s28 = scalar_lea.hbm %s579_s29, 64  ;;  %s584_s7 = scalar_lea.hbm %s868_s5, 128 }
  0x30   : > { %299 = vmatpush.msra.mxu0 %v276_v12  ;;  %v260_v18 = vadd.f32 %v259_v13, %v258_v15  ;;  %p581_p6 = scmp.ne.s32.totalorder %s579_s29, %s580_s28  ;;  %p585_p0 = scmp.lt.s32.totalorder %s579_s29, %s868_s5 }
  0x31   : > { %p586_p1 = scmp.lt.s32.totalorder %s584_s7, %s580_s28 }
  0x32   : > { %v262_v21 = vadd.f32 %v261_v16, %v260_v18  ;;  %p582_p9 = pnand %p581_p6, %p716_p11 }
  0x33   : > { %p587_p3 = por %p586_p1, %p585_p0 }
  0x34   : > { %v264_v23 = vadd.f32 %v263_v19, %v262_v21  ;;  %p583_p13 = pneg %p582_p9 }
  0x36   : > { %v266_v25 = vadd.f32 %v265_v22, %v264_v23  ;;  %p588_p4 = pnand %p587_p3, %p583_p13 }
  0x38   : > { %v268_v26 = vadd.f32 %v267_v24, %v266_v25 }
  0x3a   : > { %v269_v27 = vrot.slane %v268_v26, 4 }
  0x3c   : > { %v270_v28 = vadd.f32 %v269_v27, %v268_v26 }
  0x3e   : > { %v271_v29 = vrot.slane %v270_v28, 2 }
  0x40   : > { %v272_v30 = vadd.f32 %v271_v29, %v270_v28 }
  0x42   : > { %v273_v31 = vrot.slane %v272_v30, 1 }
  0x44   : > { %v274_v32 = vadd.f32 %v273_v31, %v272_v30 }
  0x46   : > { %v275_v33 = vmul.f32 0.015625, %v274_v32 }
  0x48   : > { %469 = vmatmul.msk.f32.vlgmr.msra.gmra.mxu0 %vm253_vm0, %v275_v33 }
  0xc5   : > { %v301_v36 = vpop.f32.mrf.mxu0 }
  0xc6   : > { %v302_v37 = vadd.f32 %v301_v36, %v280_v35 }
  0xc8   : > { %v304_v38 = vmax.f32 %v302_v37, 0.0 }
  0xca   : > { %471 = vmatmul.msk.f32.vlgmr.msra.gmra.mxu1 %vm307_vm2, %v304_v38 }
 0x147   : > { %v332_v40 = vpop.f32.mrf.mxu1 }
 0x148   : > { %v333_v41 = vadd.f32 %v332_v40, %v306_v39 }
 0x14a   : > { %v472_v42 = vmul.f32 -1.442695, %v333_v41 }
 0x14c   : > { %530 = vpow2.f32 %v472_v42 }
 0x152   : > { %v531_v43 = vpop.eup %530 }
 0x153   : > { %v338_v44 = vadd.f32 1.0, %v531_v43 }
 0x155   : > { %532 = vrcp.f32 %v338_v44  ;;  %v350_v48 = vand.u32 2147483648, %v338_v44  ;;  %v348_v50 = vand.u32 2147483647, %v338_v44  ;;  %vm344_vm4 = vweird.f32 %v338_v44 }
 0x157   : > { %v351_v52 = vor.u32 1.1754944e-38, %v350_v48  ;;  %vm349_vm6 = vcmp.eq.f32.partialorder %v348_v50, 8.507059e+37 }
 0x15b   : > { %v533_v45 = vpop.eup %532 }
 0x15c   : > { %v340_v46 = vmul.f32 %v533_v45, %v338_v44  ;;  %vm345_vm3 = vweird.f32 %v533_v45 }
 0x15d   : > { %vm346_vm5 = vmor %vm344_vm4, %vm345_vm3 }
 0x15e   : > { %v341_v47 = vsub.f32 1.0, %v340_v46 }
 0x160   : > { %v342_v49 = vmul.f32 %v533_v45, %v341_v47 }
 0x162   : > { %v343_v51 = vadd.f32 %v533_v45, %v342_v49 }
 0x164   : > { %v347_v53 = vsel %vm346_vm5, %v533_v45, %v343_v51 }
 0x165   : > { %v352_v54 = vsel %vm349_vm6, %v351_v52, %v347_v53 }
 0x166   : > { %v354_v55 = vperm.slane %v352_v54, 0 }
 0x168   : > { %v355_v56 = vmul.f32 %v354_v55, %v768_v2  ;;  %v356_v57 = vmul.f32 %v354_v55, %v770_v3  ;;  %v357_v58 = vmul.f32 %v354_v55, %v775_v5  ;;  %v358_v59 = vmul.f32 %v354_v55, %v777_v6 }
 0x169   : > { %v359_v60 = vmul.f32 %v354_v55, %v783_v9  ;;  %v360_v61 = vmul.f32 %v354_v55, %v792_v14  ;;  %v361_v62 = vmul.f32 %v354_v55, %v796_v17  ;;  %v362_v63 = vmul.f32 %v354_v55, %v252_v20 }
 0x16a   : > { %363 = vst.msk [vmem:[%s244_s26] sm:$0xff] %vm253_vm0, %v355_v56 }
 0x16b   : > { %364 = vst.msk [vmem:[%s244_s26 + $0x8] sm:$0xff] %vm253_vm0, %v356_v57 }
 0x16c   : > { %365 = vst.msk [vmem:[%s244_s26 + $0x10] sm:$0xff] %vm253_vm0, %v357_v58 }
 0x16d   : > { %366 = vst.msk [vmem:[%s244_s26 + $0x18] sm:$0xff] %vm253_vm0, %v358_v59 }
 0x16e   : > { %367 = vst.msk [vmem:[%s244_s26 + $0x20] sm:$0xff] %vm253_vm0, %v359_v60 }
 0x16f   : > { %368 = vst.msk [vmem:[%s244_s26 + $0x28] sm:$0xff] %vm253_vm0, %v360_v61 }
 0x170   : > { %369 = vst.msk [vmem:[%s244_s26 + $0x30] sm:$0xff] %vm253_vm0, %v361_v62 }
 0x171   : > { %370 = vst.msk [vmem:[%s244_s26 + $0x38] sm:$0xff] %vm253_vm0, %v362_v63 }
 0x172   : > { %591 = shalt.err (!%p588_p4)
}
 0x173   : > { %s634_s12 = smov 128   ;;  %s635_s25 = smov 8  }
 0x174   : > { %482 = dma.vmem_to_hbm [thread:$0]  (%p716_p11), %s385_s22, 1024, %s387_s8, %s372_s14, %s634_s12, %s634_s12, %s635_s25  }
 0x175 PF: > { %s401_s13 = sand.u32 1, %s618_s18   ;;  %p874_p7 = scmp.ge.s32.totalorder %s630_s21, 2 }
 0x176   : > { %s402_s15 = scalar_lea.sflag [#allocation4], %s401_s13 }
 0x177   : > { %p489_p5 = pnand %p874_p7, %p720_p12 }
 0x179   : > { %p490_p8 = pneg %p489_p5 }
 0x17b   : > { %613 = dma.done.wait (%p490_p8), %s402_s15, 1024  }
 0x17c   : > { %615 = vsyncadd (%p490_p8), %s402_s15, 4294966272  ;;  %p18_p10 = scmp.ge.s32.totalorder %s691_s24, 4   ;;  %s875_s18 = smov %s622_s19 }
 0x17d   : > { %s876_s19 = smov %s626_s20  ;;  %s877_s20 = smov %s703_s27 }
 0x17e   : > { %s878_s21 = smov %s691_s24  ;;  %20 = sbr.rel (!%p18_p10) target bundleno = 5 (0x5), region = 85 }
 0x183   :  { %408 = vsyncpa [#allocation3], 1 }
 0x184   :  { %410 = vsyncpa [#allocation3 + $0x1], 1 }
 0x185   :  { %411 = vsyncpa [#allocation4], 1 }
 0x186   :  { %413 = vsyncpa [#allocation4 + $0x1], 1 }

</bundles_post_ra>
